<compile_context>
chip_gen: v6e
topology: v6e:2x2x1
jax: 0.10.0
libtpu: 0.0.40
codegen_flags: <defaults>
</compile_context>

<pallas_src>
import functools
import math

import jax
import jax.numpy as jnp
from jax.experimental import pallas as pl
from jax.experimental.pallas import tpu as pltpu

_LANE = 128
_SUBLANE_BY_ITEMSIZE = {4: 8, 2: 16, 1: 32}


def _round_up(v: int, m: int) -> int:
    return ((v + m - 1) // m) * m


def _largest_divisor_tile(size: int, unit: int, cap: int) -> int:
    """Largest multiple of `unit` that divides `size` (a multiple of `unit`)
    and is <= cap.  Avoids any extra padding beyond the 128/sublane rounding."""
    if size <= cap:
        return size
    units = size // unit
    max_units = max(cap // unit, 1)
    for t in range(max_units, 0, -1):
        if units % t == 0:
            return t * unit
    return unit


def _tile_sizes(mp, np_, kp, in_itemsize, out_itemsize, sublane):
    """Pick (tm, tn, tk) maximizing tile size under a VMEM working-set budget
    that is safe on all of v5e / v6e / v7x (64 MiB per-TC on v7x)."""
    budget = 40 * 1024 * 1024
    cap_m, cap_n, cap_k = 512, 1024, 2048
    while True:
        tm = _largest_divisor_tile(mp, sublane, cap_m)
        tn = _largest_divisor_tile(np_, _LANE, cap_n)
        tk = _largest_divisor_tile(kp, _LANE, cap_k)
        acc_bytes = 0 if out_itemsize == 4 else tm * tn * 4
        ws = (
            2 * (tm * tk + tk * tn) * in_itemsize  # double-buffered x / W tiles
            + 2 * tm * tn * out_itemsize           # double-buffered out tile
            + 2 * tn * 4                           # bias row
            + acc_bytes                            # f32 accumulator (non-f32 out)
        )
        if ws <= budget:
            return tm, tn, tk, ws
        if cap_k > 256:
            cap_k //= 2
        elif cap_n > 256:
            cap_n //= 2
        elif cap_m > 128:
            cap_m //= 2
        elif cap_k > 128:
            cap_k //= 2
        elif cap_n > 128:
            cap_n //= 2
        else:
            return tm, tn, tk, ws  # minimal tiles; always fits in practice


# ---------------------------------------------------------------------------
# Kernels
# ---------------------------------------------------------------------------
def _dense_kernel_f32_out(x_ref, w_ref, b_ref, o_ref):
    """Output dtype is f32: accumulate directly into the resident output block
    (no scratch).  acc is initialized with the broadcast bias at k==0."""
    k = pl.program_id(2)

    @pl.when(k == 0)
    def _():
        o_ref[...] = jnp.broadcast_to(b_ref[...].astype(jnp.float32), o_ref.shape)

    o_ref[...] += jnp.dot(
        x_ref[...], w_ref[...], preferred_element_type=jnp.float32
    )


def _dense_kernel_generic(x_ref, w_ref, b_ref, o_ref, acc_ref):
    """Non-f32 output: f32 VMEM accumulator, single cast in the epilogue."""
    k = pl.program_id(2)

    @pl.when(k == 0)
    def _():
        acc_ref[...] = jnp.broadcast_to(
            b_ref[...].astype(jnp.float32), acc_ref.shape
        )

    acc_ref[...] += jnp.dot(
        x_ref[...], w_ref[...], preferred_element_type=jnp.float32
    )

    @pl.when(k == pl.num_programs(2) - 1)
    def _():
        o_ref[...] = acc_ref[...].astype(o_ref.dtype)


# ---------------------------------------------------------------------------
# Wrapper
# ---------------------------------------------------------------------------
def prepare_dense_params(weight, bias, *, compute_dtype=None):
    """One-time conversion of PyTorch-layout params (W:[out,in], b:[out]) to
    the kernel layout: W.T padded to [Kp, Np] (lane-dense N), bias as [1, Np].
    Call once per layer and reuse the result for every forward call."""
    d_out, d_in = weight.shape
    assert bias.shape == (d_out,)
    kp = _round_up(d_in, _LANE)
    np_ = _round_up(d_out, _LANE)

    w_kn = weight.T  # [d_in, d_out]
    if compute_dtype is not None:
        w_kn = w_kn.astype(compute_dtype)
    if (kp, np_) != (d_in, d_out):
        w_kn = jnp.pad(w_kn, ((0, kp - d_in), (0, np_ - d_out)))

    b_row = bias.reshape(1, d_out)
    if np_ != d_out:
        b_row = jnp.pad(b_row, ((0, 0), (0, np_ - d_out)))
    return w_kn, b_row, d_out


@functools.partial(
    jax.jit, static_argnames=("d_out", "allow_xla_fallback", "compute_dtype")
)
def dense_forward(x, w_kn, b_row, d_out, *, allow_xla_fallback=True,
                  compute_dtype=None):
    """y = x @ W.T + b  (exact nn.Linear semantics), with W/b pre-prepared by
    prepare_dense_params."""
    B, d_in = x.shape
    kp, np_ = w_kn.shape
    assert kp == _round_up(d_in, _LANE) and np_ >= d_out
    out_dtype = x.dtype

    # Small-shape fast path: pallas_call fixed overhead dominates tiny GEMMs.
    if allow_xla_fallback and B * kp * np_ <= 128 * 256 * 256:
        y = jnp.dot(
            x.astype(w_kn.dtype), w_kn[:d_in, :],
            preferred_element_type=jnp.float32,
        ) + b_row[0].astype(jnp.float32)
        return y[:, :d_out].astype(out_dtype)

    xc = x if compute_dtype is None else x.astype(compute_dtype)
    in_itemsize = jnp.dtype(xc.dtype).itemsize
    out_itemsize = jnp.dtype(out_dtype).itemsize
    sublane = _SUBLANE_BY_ITEMSIZE.get(in_itemsize, 8)

    mp = _round_up(B, sublane)
    if (mp, kp) != (B, d_in):  # pad only when actually needed
        xc = jnp.pad(xc, ((0, mp - B), (0, kp - d_in)))

    tm, tn, tk, ws_bytes = _tile_sizes(mp, np_, kp, in_itemsize, out_itemsize,
                                       sublane)
    grid = (mp // tm, np_ // tn, kp // tk)
    n_i, n_j = grid[0], grid[1]

    # Operand re-streaming: W is read once per M tile, x once per N tile.
    cost = pl.CostEstimate(
        flops=2 * mp * kp * np_,
        transcendentals=0,
        bytes_accessed=int(
            n_j * mp * kp * in_itemsize      # x, re-streamed per N tile
            + n_i * kp * np_ * in_itemsize   # W, re-streamed per M tile
            + np_ * 4                        # bias
            + mp * np_ * out_itemsize        # output written once
        ),
    )

    if out_dtype == jnp.float32:
        kernel = _dense_kernel_f32_out
        scratch = []
    else:
        kernel = _dense_kernel_generic
        scratch = [pltpu.VMEM((tm, tn), jnp.float32)]

    vmem_limit = min(max(int(ws_bytes * 1.5) + (2 << 20), 24 << 20), 56 << 20)

    out_p = pl.pallas_call(
        kernel,
        out_shape=jax.ShapeDtypeStruct((mp, np_), out_dtype),
        grid=grid,
        in_specs=[
            pl.BlockSpec((tm, tk), lambda i, j, k: (i, k)),   # x tile
            pl.BlockSpec((tk, tn), lambda i, j, k: (k, j)),   # W tile [K, N]
            pl.BlockSpec((1, tn), lambda i, j, k: (0, j)),    # bias row
        ],
        out_specs=pl.BlockSpec((tm, tn), lambda i, j, k: (i, j)),
        scratch_shapes=scratch,
        compiler_params=pltpu.CompilerParams(
            dimension_semantics=("parallel", "parallel", "arbitrary"),
            vmem_limit_bytes=vmem_limit,
        ),
        cost_estimate=cost,
    )(xc, w_kn, b_row)

    if (mp, np_) != (B, d_out):
        out_p = out_p[:B, :d_out]
    return out_p


if __name__ == "__main__":
    # Small shapes consistent with the module: a plain fully-connected layer.
    batch, input_dim, output_dim = 8, 32, 64

    key = jax.random.PRNGKey(0)
    kx, kw, kb = jax.random.split(key, 3)

    # Deterministic parameter init mimicking nn.Linear's default
    # (uniform in [-1/sqrt(in), 1/sqrt(in)]).
    bound = 1.0 / math.sqrt(input_dim)
    weight = jax.random.uniform(
        kw, (output_dim, input_dim), jnp.float32, minval=-bound, maxval=bound
    )
    bias = jax.random.uniform(
        kb, (output_dim,), jnp.float32, minval=-bound, maxval=bound
    )
    x = jax.random.normal(kx, (batch, input_dim), jnp.float32)

    # One-time parameter prep (transpose + pad), reused for every call.
    w_kn, b_row, d_out = prepare_dense_params(weight, bias)

    # Force the Pallas path for the demo (the XLA fast path would otherwise
    # absorb this tiny shape).
    y = dense_forward(x, w_kn, b_row, d_out=d_out, allow_xla_fallback=False)
    y = jax.block_until_ready(y)

    # Pure-JAX reference check (same semantics as torch's nn.Linear).
    y_ref = x @ weight.T + bias
    assert y.shape == (batch, output_dim)
    assert jnp.allclose(y, y_ref, atol=1e-5, rtol=1e-5)

    print("KERNEL_OK")
</pallas_src>

<mosaic_0001>
module attributes {stable_mosaic.version = 11 : i64} {
  func.func @_dense_kernel_f32_out(%arg0: i32, %arg1: i32, %arg2: i32, %arg3: memref<8x128xf32, #tpu.memory_space<vmem>>, %arg4: memref<128x128xf32, #tpu.memory_space<vmem>>, %arg5: memref<1x128xf32, #tpu.memory_space<vmem>>, %arg6: memref<8x128xf32, #tpu.memory_space<vmem>>) attributes {dimension_semantics = [#tpu.dimension_semantics<parallel>, #tpu.dimension_semantics<parallel>, #tpu.dimension_semantics<arbitrary>], iteration_bounds = array<i64: 1, 1, 1>, scalar_prefetch = 0 : i64, scratch_operands = 0 : i64, tpu.core_type = #tpu.core_type<tc>, window_params = [{transform_indices = @transform_0, window_bounds = array<i64: 8, 128>}, {transform_indices = @transform_1, window_bounds = array<i64: 128, 128>}, {transform_indices = @transform_2, window_bounds = array<i64: 1, 128>}, {transform_indices = @transform_3, window_bounds = array<i64: 8, 128>}]} {
    %c0_i32 = arith.constant 0 : i32
    %0 = arith.cmpi eq, %arg2, %c0_i32 : i32
    %1 = arith.extui %0 : i1 to i32
    %c0_i32_0 = arith.constant 0 : i32
    %2 = arith.cmpi ne, %1, %c0_i32_0 : i32
    scf.if %2 {
      %c0_8 = arith.constant 0 : index
      %c0_9 = arith.constant 0 : index
      %9 = vector.load %arg5[%c0_8, %c0_9] : memref<1x128xf32, #tpu.memory_space<vmem>>, vector<1x128xf32>
      %10 = vector.shape_cast %9 : vector<1x128xf32> to vector<1x128xf32>
      %11 = vector.broadcast %10 : vector<1x128xf32> to vector<8x128xf32>
      %c0_10 = arith.constant 0 : index
      %c0_11 = arith.constant 0 : index
      %12 = vector.load %arg6[%c0_10, %c0_11] : memref<8x128xf32, #tpu.memory_space<vmem>>, vector<8x128xf32>
      tpu.vector_store %arg6[%c0_10, %c0_11], %11 {strides = array<i32>} : memref<8x128xf32, #tpu.memory_space<vmem>>, vector<8x128xf32>,
    } else {
    }
    %c0 = arith.constant 0 : index
    %c0_1 = arith.constant 0 : index
    %3 = vector.load %arg6[%c0, %c0_1] : memref<8x128xf32, #tpu.memory_space<vmem>>, vector<8x128xf32>
    %c0_2 = arith.constant 0 : index
    %c0_3 = arith.constant 0 : index
    %4 = vector.load %arg3[%c0_2, %c0_3] : memref<8x128xf32, #tpu.memory_space<vmem>>, vector<8x128xf32>
    %c0_4 = arith.constant 0 : index
    %c0_5 = arith.constant 0 : index
    %5 = vector.load %arg4[%c0_4, %c0_5] : memref<128x128xf32, #tpu.memory_space<vmem>>, vector<128x128xf32>
    %cst = arith.constant dense<0.000000e+00> : vector<8x128xf32>
    %6 = tpu.matmul %4, %5, %cst {dimension_numbers = #tpu.dot_dimension_numbers<[1], [0], [0], [1], [0, 0, 1, 1], [], []>} : vector<8x128xf32>, vector<128x128xf32>, vector<8x128xf32> -> vector<8x128xf32>
    %7 = arith.addf %3, %6 : vector<8x128xf32>
    %c0_6 = arith.constant 0 : index
    %c0_7 = arith.constant 0 : index
    %8 = vector.load %arg6[%c0_6, %c0_7] : memref<8x128xf32, #tpu.memory_space<vmem>>, vector<8x128xf32>
    tpu.vector_store %arg6[%c0_6, %c0_7], %7 {strides = array<i32>} : memref<8x128xf32, #tpu.memory_space<vmem>>, vector<8x128xf32>,
    return
  }
  func.func @transform_0(%arg0: i32, %arg1: i32, %arg2: i32) -> (i32, i32) {
    %c0_i32 = arith.constant 0 : i32
    return %arg0, %arg2 : i32, i32
  }
  func.func @transform_1(%arg0: i32, %arg1: i32, %arg2: i32) -> (i32, i32) {
    %c0_i32 = arith.constant 0 : i32
    return %arg2, %arg1 : i32, i32
  }
  func.func @transform_2(%arg0: i32, %arg1: i32, %arg2: i32) -> (i32, i32) {
    %c0_i32 = arith.constant 0 : i32
    %c0_i32_0 = arith.constant 0 : i32
    return %c0_i32, %arg1 : i32, i32
  }
  func.func @transform_3(%arg0: i32, %arg1: i32, %arg2: i32) -> (i32, i32) {
    %c0_i32 = arith.constant 0 : i32
    return %arg0, %arg1 : i32, i32
  }
}

</mosaic_0001>

<bundles_post_ra>
// kernel: dense_forward.1
= control target key start
LH: loop header
LB: loop body
LE: loop exit
PB: predicated region body
PF: predicated region fallthrough
CT: control target
= control target key end

     0   :  { %8 = vsyncpa [#allocation3], 0  ;;  %s287_s0 = inlined_call_operand.vmem [shape: f32[8,128], index: 0, kind: input, shape index: {}]   ;;  %s288_s1 = inlined_call_operand.hbm [shape: f32[128,128], index: 1, kind: input, shape index: {}]   ;;  %s289_s2 = inlined_call_operand.vmem [shape: f32[1,128], index: 2, kind: input, shape index: {}]   ;;  %s290_s3 = inlined_call_operand.hbm [shape: f32[8,128], index: 3, kind: output, shape index: {}]  }
   0x1   :  { %9 = vsyncpa [#allocation4], 0  ;;  %s249_s12 = smov [#allocation2]  }
   0x2   :  { %s17_s13 = sshll.u32 %s249_s12, 4  ;;  %s18_s13 = int_to_ptr.vmem [resolvable:$true] %s17_s13 }
   0x3   :  { %s213_s14 = scalar_lea.vmem %s18_s13, 2048  ;;  %p218_p1 = scmp.lt.s32.totalorder %s18_s13, %s18_s13 }
   0x4   :  { %p214_p0 = scmp.ne.s32.totalorder %s18_s13, %s213_s14  ;;  %p219_p2 = scmp.lt.s32.totalorder %s213_s14, %s213_s14 }
   0x6   :  { %p220_p3 = por %p219_p2, %p218_p1 }
   0x8   :  { %p221_p4 = pnand %p220_p3, %p214_p0 }
   0xa   :  { %224 = shalt.err (!%p221_p4)
}
   0xb   :  { %s250_s15 = smov 128   ;;  %s251_s16 = smov 8  }
   0xc   :  { %23 = dma.hbm_to_vmem [thread:$0]  %s288_s1, 2048, %s18_s13, [#allocation3], %s250_s15, %s250_s15, %s251_s16  }
   0xd   :  { %245 = dma.done.wait [#allocation3], 2048  }
   0xe   :  { %246 = vsyncadd [#allocation3], 4294965248  ;;  %v252_v0 = vmov 0.0   ;;  %vm253_vm0 = vmmov 0   ;;  %v58_v1 = vld [vmem:[#allocation2 + $0x78] sm:$0xff]  ;;  %v57_v2 = vld [vmem:[#allocation2 + $0x70] sm:$0xff] }
   0xf   :  { %164 = vmatprep.subr.mxu0 %v252_v0  ;;  %196 = vmatprep.mubr.msk.f32.mxu0 %vm253_vm0, %v252_v0  ;;  %v56_v3 = vld [vmem:[#allocation2 + $0x68] sm:$0xff]  ;;  %v55_v4 = vld [vmem:[#allocation2 + $0x60] sm:$0xff]  ;;  %v54_v5 = vld [vmem:[#allocation2 + $0x58] sm:$0xff]  ;;  %s254_s22 = smov [#allocation5]  }
  0x10   :  { %165 = vmatpush3.msra.mxu0 %v58_v1  ;;  %v53_v6 = vld [vmem:[#allocation2 + $0x50] sm:$0xff]  ;;  %v52_v7 = vld [vmem:[#allocation2 + $0x48] sm:$0xff]  ;;  %v51_v8 = vld [vmem:[#allocation2 + $0x40] sm:$0xff]  ;;  %s137_s23 = sshll.u32 %s254_s22, 4  ;;  %s138_s23 = int_to_ptr.vmem [resolvable:$true] %s137_s23 }
  0x11   :  { %166 = vmatprep.subr.mxu0 %v252_v0  ;;  %v50_v9 = vld [vmem:[#allocation2 + $0x38] sm:$0xff]  ;;  %v49_v10 = vld [vmem:[#allocation2 + $0x30] sm:$0xff]  ;;  %v48_v11 = vld [vmem:[#allocation2 + $0x28] sm:$0xff]  ;;  %s225_s24 = scalar_lea.vmem %s138_s23, 128  ;;  %p230_p6 = scmp.lt.s32.totalorder %s138_s23, %s138_s23 }
  0x12   :  { %167 = vmatpush3.msra.mxu0 %v57_v2  ;;  %v47_v12 = vld [vmem:[#allocation2 + $0x20] sm:$0xff]  ;;  %v46_v13 = vld [vmem:[#allocation2 + $0x18] sm:$0xff]  ;;  %v45_v14 = vld [vmem:[#allocation2 + $0x10] sm:$0xff]  ;;  %p226_p5 = scmp.ne.s32.totalorder %s138_s23, %s225_s24  ;;  %p231_p7 = scmp.lt.s32.totalorder %s225_s24, %s225_s24 }
  0x13   :  { %168 = vmatprep.subr.mxu0 %v252_v0  ;;  %v44_v15 = vld [vmem:[#allocation2 + $0x8] sm:$0xff]  ;;  %v43_v16 = vld [vmem:[#allocation2] sm:$0xff] }
  0x14   :  { %169 = vmatpush3.msra.mxu0 %v56_v3  ;;  %v42_v17 = vld [vmem:[%s287_s0] sm:$0xff]  ;;  %p232_p8 = por %p231_p7, %p230_p6 }
  0x15   :  { %170 = vmatprep.subr.mxu0 %v252_v0  ;;  %v146_v18 = vld [vmem:[%s289_s2] ss:$0 sm:$0xff] }
  0x16   :  { %171 = vmatpush3.msra.mxu0 %v55_v4  ;;  %p233_p9 = pnand %p232_p8, %p226_p5 }
  0x17   :  { %172 = vmatprep.subr.mxu0 %v252_v0 }
  0x18   :  { %173 = vmatpush3.msra.mxu0 %v54_v5 }
  0x19   :  { %174 = vmatprep.subr.mxu0 %v252_v0 }
  0x1a   :  { %175 = vmatpush3.msra.mxu0 %v53_v6 }
  0x1b   :  { %176 = vmatprep.subr.mxu0 %v252_v0 }
  0x1c   :  { %177 = vmatpush3.msra.mxu0 %v52_v7 }
  0x1d   :  { %178 = vmatprep.subr.mxu0 %v252_v0 }
  0x1e   :  { %179 = vmatpush3.msra.mxu0 %v51_v8 }
  0x1f   :  { %180 = vmatprep.subr.mxu0 %v252_v0 }
  0x20   :  { %181 = vmatpush3.msra.mxu0 %v50_v9 }
  0x21   :  { %182 = vmatprep.subr.mxu0 %v252_v0 }
  0x22   :  { %183 = vmatpush3.msra.mxu0 %v49_v10 }
  0x23   :  { %184 = vmatprep.subr.mxu0 %v252_v0 }
  0x24   :  { %185 = vmatpush3.msra.mxu0 %v48_v11 }
  0x25   :  { %186 = vmatprep.subr.mxu0 %v252_v0 }
  0x26   :  { %187 = vmatpush3.msra.mxu0 %v47_v12 }
  0x27   :  { %188 = vmatprep.subr.mxu0 %v252_v0 }
  0x28   :  { %189 = vmatpush3.msra.mxu0 %v46_v13 }
  0x29   :  { %190 = vmatprep.subr.mxu0 %v252_v0 }
  0x2a   :  { %191 = vmatpush3.msra.mxu0 %v45_v14 }
  0x2b   :  { %192 = vmatprep.subr.mxu0 %v252_v0 }
  0x2c   :  { %193 = vmatpush3.msra.mxu0 %v44_v15 }
  0x2d   :  { %194 = vmatprep.subr.mxu0 %v252_v0 }
  0x2e   :  { %195 = vmatpush3.msra.mxu0 %v43_v16 }
  0x2f   :  { %197 = vmatmul.mubr.f32.vlgmr.msra.gmra.mxu0 %v42_v17 }
  0xef   :  { %v125_v19 = vpop.f32.mrf.mxu0 }
  0xf0   :  { %v129_v20 = vadd.f32 %v146_v18, %v125_v19 }
  0xf1   :  { %v198_v21 = vpop.f32.mrf.mxu0 }
  0xf2   :  { %130 = vst [vmem:[#allocation5] sm:$0xff] %v129_v20 }
  0xf3   :  { %236 = shalt.err (!%p233_p9)
}
  0xf4   :  { %140 = dma.vmem_to_hbm [thread:$0]  %s138_s23, 128, %s290_s3, [#allocation4]  }
  0xf5   :  { %247 = dma.done.wait [#allocation4], 128  }
  0xf6   :  { %248 = vsyncadd [#allocation4], 4294967168 }
  0xf7   :  { %144 = vsyncpa [#allocation3], 1 }
  0xf8   :  { %145 = vsyncpa [#allocation4], 1 }

</bundles_post_ra>
